<compile_context>
chip_gen: v7x
topology: tpu7x:2x2x1
jax: 0.10.0
libtpu: 0.0.40
codegen_flags: <defaults>
</compile_context>

<pallas_src>
import jax
import jax.numpy as jnp
from jax import lax
from jax.experimental import pallas as pl
from jax.experimental.pallas import tpu as pltpu

LANE = 128
_F32 = jnp.float32


def _cdiv(a, b):
    return -(-a // b)


def _round_up(v, m):
    return ((v + m - 1) // m) * m


def _strict_lower_tri(n, m):
    """T[k, j] = 1.0 if k < j else 0.0  ->  x @ T is an exclusive lane scan."""
    row = lax.broadcasted_iota(jnp.int32, (n, m), 0)
    col = lax.broadcasted_iota(jnp.int32, (n, m), 1)
    return (row < col).astype(_F32)


def _lower_tri_incl(n):
    """T[i, k] = 1.0 if k <= i else 0.0  ->  T @ x is an inclusive row scan."""
    row = lax.broadcasted_iota(jnp.int32, (n, n), 0)
    col = lax.broadcasted_iota(jnp.int32, (n, n), 1)
    return (col <= row).astype(_F32)


def _dot(a, b):
    # HIGHEST precision keeps the f32 semantics of torch.cumsum (the matrices
    # are exact 0/1 values, so the result is f32-accurate).
    return jnp.dot(a, b, precision=lax.Precision.HIGHEST,
                   preferred_element_type=_F32)


# ---------------------------------------------------------------------------
# Kernels
# ---------------------------------------------------------------------------
def _dim1_kernel(x_ref, o_ref):
    """Exclusive cumsum along lanes with a prepended zero column.

    x_ref: (rows_in, C) block;  o_ref: (rows_out, C+1) block, rows_out <= rows_in.
    o[:, j] = sum_{k < j} x[:, k] for j in [0, C].
    """
    rows = o_ref.shape[0]
    c = x_ref.shape[1]
    nc = _cdiv(c, LANE)
    tri = _strict_lower_tri(LANE, LANE)
    carry = jnp.zeros((rows, 1), _F32)
    for b in range(nc):
        lo = b * LANE
        nb = min(LANE, c - lo)
        chunk = x_ref[0:rows, lo:lo + nb].astype(_F32)          # (rows, nb)
        piece = _dot(chunk, tri[0:nb, :]) + carry               # (rows, 128) exclusive
        hi = min(lo + LANE, c + 1)
        o_ref[:, lo:hi] = piece[:, 0:hi - lo].astype(o_ref.dtype)
        if (b + 1 < nc) or (c % LANE == 0):
            carry = carry + jnp.sum(chunk, axis=1, keepdims=True)
    if c % LANE == 0:
        # The trailing "row total" column was not covered by any input chunk.
        o_ref[:, c:c + 1] = carry.astype(o_ref.dtype)


def _dim0_kernel(x_ref, o_ref):
    """Exclusive cumsum along lanes, then inclusive cumsum along rows (fused).

    x_ref: (R, C);  o_ref: (R, C).
    """
    r, c = x_ref.shape
    nc = _cdiv(c, LANE)
    tri_l = _strict_lower_tri(LANE, LANE)
    tri_r = _lower_tri_incl(r)
    carry = jnp.zeros((r, 1), _F32)
    for b in range(nc):
        lo = b * LANE
        nb = min(LANE, c - lo)
        chunk = x_ref[:, lo:lo + nb].astype(_F32)
        excl = _dot(chunk, tri_l[0:nb, :]) + carry               # per-row exclusive scan
        rowscan = _dot(tri_r, excl)                              # cumsum over axis 0
        o_ref[:, lo:lo + nb] = rowscan[:, 0:nb].astype(o_ref.dtype)
        if b + 1 < nc:
            carry = carry + jnp.sum(chunk, axis=1, keepdims=True)


# ---------------------------------------------------------------------------
# Wrappers
# ---------------------------------------------------------------------------
def _forward_dim1(x):
    r, c = x.shape
    r_out, w_out = r - 1, c + 1
    if r_out <= 0:
        return jnp.zeros((0, w_out), x.dtype)

    if r_out >= 8:
        # Adaptive row block: multiple of 8, <= ~1 MiB of input per block,
        # and aim for >= 4 grid steps (DMA pipelining + v7x megacore).
        budget = max(8, ((1 << 20) // max(c * 4, 1)) // 8 * 8)
        target = _round_up(_cdiv(r_out, 4), 8)
        row_block = max(8, min(budget, target, (r_out // 8) * 8))
        grid_rows = _cdiv(r_out, row_block)
        in_spec = pl.BlockSpec((row_block, c), lambda i: (i, 0))
        out_spec = pl.BlockSpec((row_block, w_out), lambda i: (i, 0))
    else:
        grid_rows = 1
        in_spec = pl.BlockSpec((r, c), lambda i: (0, 0))
        out_spec = pl.BlockSpec((r_out, w_out), lambda i: (0, 0))

    return pl.pallas_call(
        _dim1_kernel,
        out_shape=jax.ShapeDtypeStruct((r_out, w_out), x.dtype),
        grid=(grid_rows,),
        in_specs=[in_spec],
        out_specs=out_spec,
        compiler_params=pltpu.CompilerParams(
            dimension_semantics=("parallel",),
            vmem_limit_bytes=32 * 1024 * 1024),
    )(x)


def _forward_dim0(x):
    # TODO(synk): for very large inputs, tile the lane axis with a carried
    # per-row running sum instead of a single whole-array block.
    r, c = x.shape
    return pl.pallas_call(
        _dim0_kernel,
        out_shape=jax.ShapeDtypeStruct((r, c), x.dtype),
        grid=(1,),
        in_specs=[pl.BlockSpec((r, c), lambda i: (0, 0))],
        out_specs=pl.BlockSpec((r, c), lambda i: (0, 0)),
        compiler_params=pltpu.CompilerParams(
            dimension_semantics=("arbitrary",),
            vmem_limit_bytes=32 * 1024 * 1024),
    )(x)


def model_forward(x, dim):
    """Forward pass of the PyTorch Model for 2-D x."""
    assert x.ndim == 2
    if dim == 0:
        return _forward_dim0(x)
    assert dim == 1
    return _forward_dim1(x)


def _reference_forward(x, dim):
    if dim == 0:
        excl = jnp.concatenate(
            [jnp.zeros((x.shape[0], 1), x.dtype),
             jnp.cumsum(x, axis=1)[:, :-1]], axis=1)
        return jnp.cumsum(excl, axis=0)
    zeros = jnp.zeros_like(x[:, :1])
    cat = jnp.concatenate([zeros, x], axis=1)[:-1]
    return jnp.cumsum(cat, axis=1)


if __name__ == "__main__":
    key = jax.random.PRNGKey(0)
    x = jax.random.normal(key, (8, 32), dtype=jnp.float32)

    # Canonical task configuration uses dim=1.
    out = jax.block_until_ready(model_forward(x, 1))
    ref = _reference_forward(x, 1)
    assert out.shape == ref.shape == (7, 33), (out.shape, ref.shape)
    assert jnp.allclose(out, ref, atol=1e-4, rtol=1e-4)

    # dim == 0 (custom-CUDA-kernel) branch.
    out0 = jax.block_until_ready(model_forward(x, 0))
    ref0 = _reference_forward(x, 0)
    assert out0.shape == ref0.shape == (8, 32)
    assert jnp.allclose(out0, ref0, atol=1e-4, rtol=1e-4)

    # Tiled (multi-row-block, multi-lane-chunk) dim==1 path.
    x2 = jax.random.normal(jax.random.PRNGKey(1), (24, 300), dtype=jnp.float32)
    out2 = jax.block_until_ready(model_forward(x2, 1))
    ref2 = _reference_forward(x2, 1)
    assert out2.shape == ref2.shape == (23, 301)
    assert jnp.allclose(out2, ref2, atol=1e-4, rtol=1e-4)

    # C a multiple of 128 exercises the explicit trailing-total column.
    x3 = jax.random.normal(jax.random.PRNGKey(2), (16, 256), dtype=jnp.float32)
    out3 = jax.block_until_ready(model_forward(x3, 1))
    ref3 = _reference_forward(x3, 1)
    assert out3.shape == ref3.shape == (15, 257)
    assert jnp.allclose(out3, ref3, atol=1e-4, rtol=1e-4)

    print("KERNEL_OK")
</pallas_src>

<mosaic_0001>
module attributes {stable_mosaic.version = 11 : i64} {
  func.func @_dim1_kernel(%arg0: i32, %arg1: memref<8x32xf32, #tpu.memory_space<vmem>>, %arg2: memref<7x33xf32, #tpu.memory_space<vmem>>) attributes {dimension_semantics = [#tpu.dimension_semantics<parallel>], iteration_bounds = array<i64: 1>, scalar_prefetch = 0 : i64, scratch_operands = 0 : i64, tpu.core_type = #tpu.core_type<tc>, window_params = [{pipeline_mode = #tpu.pipeline_mode<synchronous>, transform_indices = @transform_0, window_bounds = array<i64: 8, 32>}, {pipeline_mode = #tpu.pipeline_mode<synchronous>, transform_indices = @transform_1, window_bounds = array<i64: 7, 33>}]} {
    %0 = tpu.iota {dimensions = array<i32: 0>} : vector<128x128xi32>
    %1 = tpu.iota {dimensions = array<i32: 1>} : vector<128x128xi32>
    %2 = arith.cmpi slt, %0, %1 : vector<128x128xi32>
    %3 = arith.extui %2 : vector<128x128xi1> to vector<128x128xi32>
    %4 = arith.sitofp %3 : vector<128x128xi32> to vector<128x128xf32>
    %cst = arith.constant 0.000000e+00 : f32
    %5 = vector.broadcast %cst : f32 to vector<7x1xf32>
    %c0 = arith.constant 0 : index
    %c0_0 = arith.constant 0 : index
    %6 = vector.load %arg1[%c0, %c0_0] : memref<8x32xf32, #tpu.memory_space<vmem>>, vector<7x32xf32>
    %7 = vector.extract_strided_slice %4 {offsets = [0, 0], sizes = [32, 128], strides = [1, 1]} : vector<128x128xf32> to vector<32x128xf32>
    %cst_1 = arith.constant dense<0.000000e+00> : vector<7x128xf32>
    %8 = tpu.matmul %6, %7, %cst_1 {dimension_numbers = #tpu.dot_dimension_numbers<[1], [0], [0], [1], [0, 0, 1, 1], [], []>, precision = #tpu.contract_precision<fp32>} : vector<7x32xf32>, vector<32x128xf32>, vector<7x128xf32> -> vector<7x128xf32>
    %9 = vector.broadcast %5 : vector<7x1xf32> to vector<7x128xf32>
    %10 = arith.addf %8, %9 : vector<7x128xf32>
    %11 = vector.extract_strided_slice %10 {offsets = [0, 0], sizes = [7, 33], strides = [1, 1]} : vector<7x128xf32> to vector<7x33xf32>
    %c0_2 = arith.constant 0 : index
    %c0_3 = arith.constant 0 : index
    %12 = vector.load %arg2[%c0_2, %c0_3] : memref<7x33xf32, #tpu.memory_space<vmem>>, vector<7x33xf32>
    tpu.vector_store %arg2[%c0_2, %c0_3], %11 {strides = array<i32>} : memref<7x33xf32, #tpu.memory_space<vmem>>, vector<7x33xf32>,
    return
  }
  func.func @transform_0(%arg0: i32) -> (i32, i32) {
    %c0_i32 = arith.constant 0 : i32
    %c0_i32_0 = arith.constant 0 : i32
    %c0_i32_1 = arith.constant 0 : i32
    return %c0_i32, %c0_i32_0 : i32, i32
  }
  func.func @transform_1(%arg0: i32) -> (i32, i32) {
    %c0_i32 = arith.constant 0 : i32
    %c0_i32_0 = arith.constant 0 : i32
    %c0_i32_1 = arith.constant 0 : i32
    return %c0_i32, %c0_i32_0 : i32, i32
  }
}

</mosaic_0001>

<bundles_post_ra>
// kernel: tpu_custom_call.1
= control target key start
LH: loop header
LB: loop body
LE: loop exit
PB: predicated region body
PF: predicated region fallthrough
CT: control target
= control target key end

     0   :  { %6 = vsyncpa [#allocation3], 0  ;;  %s849_s0 = inlined_call_operand.hbm [shape: f32[8,32], index: 0, kind: input, shape index: {}]   ;;  %s850_s1 = inlined_call_operand.hbm [shape: f32[7,33], index: 1, kind: output, shape index: {}]  }
   0x1   :  { %7 = vsyncpa [#allocation4], 0  ;;  %s758_s6 = smov [#allocation2]   ;;  %s710_s10 = scalar_lea.hbm %s849_s0, 128 }
   0x2   :  { %s14_s7 = sshll.u32 %s758_s6, 4  ;;  %p711_p0 = scmp.ne.s32.totalorder %s849_s0, %s710_s10  ;;  %s15_s7 = int_to_ptr.vmem [resolvable:$true] %s14_s7 }
   0x3   :  { %p714_p1 = scmp.lt.u32.totalorder %s710_s10, %s849_s0 }
   0x5   :  { %p716_p2 = pnand %p714_p1, %p711_p0 }
   0x7   :  { %719 = shalt.err (!%p716_p2)
}
   0x8   :  { %s720_s15 = scalar_lea.vmem %s15_s7, 128  ;;  %p725_p4 = scmp.lt.s32.totalorder %s15_s7, %s15_s7 }
   0x9   :  { %p721_p3 = scmp.ne.s32.totalorder %s15_s7, %s720_s15  ;;  %p726_p5 = scmp.lt.s32.totalorder %s720_s15, %s720_s15 }
   0xb   :  { %p727_p6 = por %p726_p5, %p725_p4 }
   0xd   :  { %p728_p7 = pnand %p727_p6, %p721_p3 }
   0xf   :  { %731 = shalt.err (!%p728_p7)
}
  0x10   :  { %17 = dma.hbm_to_vmem [thread:$0]  %s849_s0, 128, %s15_s7, [#allocation3]  }
  0x11   :  { %754 = dma.done.wait [#allocation3], 128  }
  0x12   :  { %755 = vsyncadd [#allocation3], 4294967168  ;;  %v21_v0 = vlaneseq  ;;  %v759_v1 = vmov 0.0|0.0   ;;  %vm760_vm0 = vmmov 0   ;;  %v761_v4 = vmov 0.0   ;;  %s763_s0 = smov [#allocation5]  }
  0x13   :  { %677 = vmatprep.subr.bf16.mxu0 %v759_v1  ;;  %659 = vmatprep.subr.bf16.mxu1 %v759_v1  ;;  %vm41_vm2 = vcmask 261120   ;;  %v40_v14 = vld [vmem:[#allocation2] sm:$0x7f]  ;;  %v762_v17 = vmov 1.0|1.0   ;;  %s538_s18 = sshll.u32 %s763_s0, 4  ;;  %s539_s18 = int_to_ptr.vmem [resolvable:$true] %s538_s18 }
  0x14   :  { %v22_v2 = vshrl.u32 %v21_v0, 7  ;;  %v27_v3 = vand.u32 127, %v21_v0  ;;  %634 = vmatprep.mubr.msk.f32.mxu0 %vm760_vm0, %v761_v4  ;;  %601 = vmatprep.mubr.msk.f32.mxu1 %vm760_vm0, %v761_v4  ;;  %v43_v21 = vsel %vm41_vm2, %v40_v14, 0  ;;  %vm530_vm8 = vcmask 268288   ;;  %s732_s19 = scalar_lea.vmem %s539_s18, 128  ;;  %p737_p9 = scmp.lt.s32.totalorder %s539_s18, %s539_s18 }
  0x15   :  { %v114_v24 = vand.u32 4294901760, %v43_v21  ;;  %p733_p8 = scmp.ne.s32.totalorder %s539_s18, %s732_s19  ;;  %p738_p10 = scmp.lt.s32.totalorder %s732_s19, %s732_s19 }
  0x16   :  { %v23_v5 = vadd.s32 8, %v22_v2  ;;  %vm28_vm1 = vcmp.lt.s32.totalorder %v22_v2, %v27_v3  ;;  %v24_v6 = vadd.s32 16, %v22_v2  ;;  %v25_v7 = vadd.s32 24, %v22_v2 }
  0x17   :  { %v547_v8 = vsel %vm28_vm1, 1.0, %v761_v4  ;;  %v115_v28 = vsub.f32 %v43_v21, %v114_v24  ;;  %p739_p11 = por %p738_p10, %p737_p9 }
  0x18   :  { %vm29_vm3 = vcmp.lt.s32.totalorder %v23_v5, %v27_v3  ;;  %v126_v9 = vsub.f32 %v547_v8, %v547_v8  ;;  %vm30_vm4 = vcmp.lt.s32.totalorder %v24_v6, %v27_v3  ;;  %vm31_vm5 = vcmp.lt.s32.totalorder %v25_v7, %v27_v3 }
  0x19   :  { %v548_v10 = vsel %vm29_vm3, 1.0, %v761_v4  ;;  %vm794_vm6 = vmpackc.low %vm29_vm3, %vm28_vm1  ;;  %v549_v12 = vsel %vm30_vm4, 1.0, %v761_v4  ;;  %v550_v13 = vsel %vm31_vm5, 1.0, %v761_v4  ;;  %v116_v34 = vand.u32 4294901760, %v115_v28  ;;  %p740_p12 = pnand %p739_p11, %p733_p8 }
  0x1a   :  { %v127_v15 = vand.u32 4294901760, %v126_v9  ;;  %v133_v16 = vsub.f32 %v548_v10, %v548_v10  ;;  %679 = vmatpush3.bf16.msk.msra.mxu0 %vm794_vm6, %v762_v17  ;;  %661 = vmatpush3.bf16.msk.msra.mxu1 %vm794_vm6, %v762_v17  ;;  %v140_v18 = vsub.f32 %v549_v12, %v549_v12  ;;  %v147_v19 = vsub.f32 %v550_v13, %v550_v13  ;;  %vm807_vm7 = vmpackc.low %vm31_vm5, %vm30_vm4 }
  0x1b   :  { %680 = vmatprep.subr.bf16.mxu0 %v759_v1  ;;  %662 = vmatprep.subr.bf16.mxu1 %v759_v1  ;;  %v117_v35 = vsub.f32 %v115_v28, %v116_v34 }
  0x1c   :  { %v128_v22 = vsub.f32 %v126_v9, %v127_v15  ;;  %v134_v23 = vand.u32 4294901760, %v133_v16  ;;  %v141_v25 = vand.u32 4294901760, %v140_v18  ;;  %v148_v26 = vand.u32 4294901760, %v147_v19 }
  0x1d   :  { %v118_v40 = vand.u32 4294901760, %v117_v35  ;;  %v672_v42 = vpack.c.bf16 %v133_v16, %v126_v9  ;;  %v675_v43 = vpack.c.bf16 %v147_v19, %v140_v18 }
  0x1e   :  { %v135_v27 = vsub.f32 %v133_v16, %v134_v23  ;;  %682 = vmatpush3.bf16.msk.msra.mxu0 %vm807_vm7, %v762_v17  ;;  %664 = vmatpush3.bf16.msk.msra.mxu1 %vm807_vm7, %v762_v17  ;;  %v129_v29 = vand.u32 4294901760, %v128_v22  ;;  %v684_v30 = vpack.c.bf16 %v134_v23, %v127_v15  ;;  %v142_v31 = vsub.f32 %v140_v18, %v141_v25 }
  0x1f   :  { %683 = vmatprep.subr.bf16.mxu0 %v759_v1  ;;  %665 = vmatprep.subr.bf16.mxu1 %v759_v1  ;;  %v149_v32 = vsub.f32 %v147_v19, %v148_v26  ;;  %v687_v37 = vpack.c.bf16 %v148_v26, %v141_v25 }
  0x20   :  { %v136_v33 = vand.u32 4294901760, %v135_v27  ;;  %v143_v38 = vand.u32 4294901760, %v142_v31 }
  0x21   :  { %635 = vmatmul.mubr.f32.vlgmr.msra.gmra.mrb[0].mxu0 %v116_v34  ;;  %v150_v39 = vand.u32 4294901760, %v149_v32  ;;  %602 = vmatmul.mubr.f32.vlgmr.msra.gmra.mrb[0].mxu1 %v118_v40 }
  0x22   :  { %685 = vmatpush3.bf16.msra.mxu0 %v684_v30  ;;  %v666_v36 = vpack.c.bf16 %v136_v33, %v129_v29  ;;  %645 = vmatprep.mubr.msk.f32.mxu0 %vm760_vm0, %v761_v4 }
  0x23   :  { %686 = vmatprep.subr.bf16.mxu0 %v759_v1  ;;  %v669_v41 = vpack.c.bf16 %v150_v39, %v143_v38  ;;  %612 = vmatprep.mubr.msk.f32.mxu1 %vm760_vm0, %v761_v4 }
  0x24   :  { %667 = vmatpush3.bf16.msra.mxu1 %v666_v36 }
  0x25   :  { %668 = vmatprep.subr.bf16.mxu1 %v759_v1 }
  0x26   :  { %688 = vmatpush3.bf16.msra.mxu0 %v687_v37 }
  0x27   :  { %689 = vmatprep.subr.bf16.mxu0 %v759_v1 }
  0x28   :  { %670 = vmatpush3.bf16.msra.mxu1 %v669_v41 }
  0x29   :  { %646 = vmatmul.mubr.f32.vlgmr.msra.gmra.mrb[0].mxu0 %v114_v24  ;;  %671 = vmatprep.subr.bf16.mxu1 %v759_v1 }
  0x2a   :  { %691 = vmatpush3.bf16.msk.msra.mxu0 %vm794_vm6, %v762_v17  ;;  %656 = vmatprep.mubr.msk.f32.mxu0 %vm760_vm0, %v761_v4 }
  0x2b   :  { %692 = vmatprep.subr.bf16.mxu0 %v759_v1  ;;  %613 = vmatmul.mubr.f32.vlgmr.msra.gmra.mrb[0].mxu1 %v114_v24 }
  0x2c   :  { %673 = vmatpush3.bf16.msra.mxu1 %v672_v42  ;;  %623 = vmatprep.mubr.msk.f32.mxu1 %vm760_vm0, %v761_v4 }
  0x2d   :  { %674 = vmatprep.subr.bf16.mxu1 %v759_v1 }
  0x2e   :  { %694 = vmatpush3.bf16.msk.msra.mxu0 %vm807_vm7, %v762_v17 }
  0x30   :  { %676 = vmatpush3.bf16.msra.mxu1 %v675_v43 }
  0x31   :  { %657 = vmatmul.mubr.f32.vlgmr.msra.gmra.mrb[0].mxu0 %v114_v24 }
  0x33   :  { %624 = vmatmul.mubr.f32.vlgmr.msra.gmra.mrb[0].mxu1 %v115_v28 }
 0x104   :  { %v526_v44 = vpop.f32.mrb[0].mxu0 }
 0x105   :  { %v658_v45 = vpop.f32.mrb[1].mxu0 }
 0x106   :  { %v291_v46 = vpop.f32.mrb[0].mxu1 }
 0x107   :  { %v695_v47 = vadd.f32 %v526_v44, %v291_v46  ;;  %v625_v48 = vpop.f32.mrb[1].mxu1 }
 0x109   :  { %531 = vst.msk [vmem:[#allocation5] sm:$0x7f] %vm530_vm8, %v695_v47 }
 0x10a   :  { %743 = shalt.err (!%p740_p12)
}
 0x10b   :  { %s744_s22 = scalar_lea.hbm %s850_s1, 128 }
 0x10c   :  { %p745_p13 = scmp.ne.s32.totalorder %s850_s1, %s744_s22  ;;  %p748_p0 = scmp.lt.u32.totalorder %s744_s22, %s850_s1 }
 0x10e   :  { %p750_p1 = pnand %p748_p0, %p745_p13 }
 0x110   :  { %753 = shalt.err (!%p750_p1)
}
 0x111   :  { %541 = dma.vmem_to_hbm [thread:$0]  %s539_s18, 128, %s850_s1, [#allocation4]  }
 0x112   :  { %756 = dma.done.wait [#allocation4], 128  }
 0x113   :  { %757 = vsyncadd [#allocation4], 4294967168 }
 0x114   :  { %545 = vsyncpa [#allocation3], 1 }
 0x115   :  { %546 = vsyncpa [#allocation4], 1 }

</bundles_post_ra>
